<compile_context>
chip_gen: v7x
topology: tpu7x:2x2x1
jax: 0.10.0
libtpu: 0.0.40
codegen_flags: <defaults>
</compile_context>

<pallas_src>
import jax
import jax.numpy as jnp
from jax.experimental import pallas as pl
from jax.experimental.pallas import tpu as pltpu


# ---------------------------------------------------------------------------
# Pallas kernel: tiled, pipelined modulation   out = scale * noise + bias
# noise/out blocks: (tile_r, tile_hw); scale/bias blocks: (tile_r, 1), reused
# across every spatial tile (constant index_map along the spatial grid axis).
# ---------------------------------------------------------------------------
def _modulate_kernel(scale_ref, bias_ref, noise_ref, out_ref):
    x = noise_ref[...].astype(jnp.float32)
    out_ref[...] = (scale_ref[...] * x + bias_ref[...]).astype(out_ref.dtype)


_LANE_TILE_CAP = 2048            # lanes per block (multiple of 128) when H*W is large
_BLOCK_BYTE_TARGET = 4 << 20     # ~4 MiB per noise/out block (2-4 MiB sweet spot)
_SPLIT_MIN_BYTES = 1 << 20       # only force >=2 blocks when there is real work


def _choose_tiles(rc, hw, elem_bytes):
    """Byte-budgeted tile sizes + pl.cdiv grid (edge blocks masked by Pallas)."""
    # Lane axis: full extent when small (full dim is always a legal block dim),
    # otherwise a 128-multiple cap; partial edge blocks are masked.
    tile_hw = hw if hw <= _LANE_TILE_CAP else _LANE_TILE_CAP
    # Row axis: as many sublane groups of 8 as fit the byte budget (raises tile_r
    # automatically when H*W, hence tile_hw, is small).
    rows = max(8, (_BLOCK_BYTE_TARGET // (tile_hw * elem_bytes)) // 8 * 8)
    tile_r = rc if rc <= rows else rows

    grid_r = pl.cdiv(rc, tile_r)
    grid_hw = pl.cdiv(hw, tile_hw)

    # v7x megacore: guarantee >= 2 parallel blocks when the problem is big enough
    # to be worth splitting (both grid axes are marked "parallel").
    if grid_r * grid_hw < 2 and rc * hw * elem_bytes >= _SPLIT_MIN_BYTES:
        if rc >= 16:
            tile_r = (((rc + 1) // 2) + 7) // 8 * 8        # ~half, sublane-aligned
            grid_r = pl.cdiv(rc, tile_r)
        elif hw >= 256:
            tile_hw = ((((hw + 1) // 2) + 127) // 128) * 128
            grid_hw = pl.cdiv(hw, tile_hw)
    return tile_r, tile_hw, grid_r, grid_hw


def _affine_head(emb, params):
    """fc_scale / fc_bias / shared `expand` (1x1 conv), fused into two matmuls.

    Tiny (B,E)x(E,C)-scale work; done in plain jnp per perf review to avoid a
    second kernel launch and an HBM round trip for (B, C) scalars."""
    b = emb.shape[0]
    c = params["bc"].shape[-1]
    w_sb = jnp.concatenate([params["ws_t"], params["wb_t"]], axis=1)    # (E, 2C)
    b_sb = jnp.concatenate([params["bs"], params["bb"]], axis=1)        # (1, 2C)
    sb = emb @ w_sb + b_sb                                              # (B, 2C)
    sb = jnp.concatenate([sb[:, :c], sb[:, c:]], axis=0)                # (2B, C)
    sb = sb @ params["wc_t"] + params["bc"]                             # (2B, C)
    return sb[:b], sb[b:]                                               # scale, bias


def modulation_layer(emb, noise, params):
    """emb: (B, E) f32, noise: (B, C, H, W) NCHW.  Returns (B, C, H, W)."""
    B, C, H, W = noise.shape
    HW = H * W
    RC = B * C

    # --- 1) tiny affine head (scale/bias, each (B, C)) ----------------------
    scale, bias = _affine_head(emb, params)
    scale_col = scale.astype(jnp.float32).reshape(RC, 1)
    bias_col = bias.astype(jnp.float32).reshape(RC, 1)

    # --- 2) pack to (B*C, H*W): dense sublane/lane layout even for small C --
    noise_flat = noise.reshape(RC, HW)
    elem = jnp.dtype(noise.dtype).itemsize
    tile_r, tile_hw, grid_r, grid_hw = _choose_tiles(RC, HW, elem)

    out_flat = pl.pallas_call(
        _modulate_kernel,
        out_shape=jax.ShapeDtypeStruct((RC, HW), noise.dtype),
        grid_spec=pltpu.PrefetchScalarGridSpec(
            num_scalar_prefetch=0,
            grid=(grid_r, grid_hw),
            in_specs=[
                pl.BlockSpec((tile_r, 1), lambda r, s: (r, 0)),         # scale
                pl.BlockSpec((tile_r, 1), lambda r, s: (r, 0)),         # bias
                pl.BlockSpec((tile_r, tile_hw), lambda r, s: (r, s)),   # noise
            ],
            out_specs=pl.BlockSpec((tile_r, tile_hw), lambda r, s: (r, s)),
        ),
        compiler_params=pltpu.CompilerParams(
            dimension_semantics=("parallel", "parallel"),
            vmem_limit_bytes=48 * 1024 * 1024,
        ),
    )(scale_col, bias_col, noise_flat)

    return out_flat.reshape(B, C, H, W)


def reference(emb, noise, params):
    """Pure-JAX reference mirroring the PyTorch forward (un-fused matmuls)."""
    scale = emb @ params["ws_t"] + params["bs"]
    bias = emb @ params["wb_t"] + params["bb"]
    scale = scale @ params["wc_t"] + params["bc"]
    bias = bias @ params["wc_t"] + params["bc"]
    return scale[:, :, None, None] * noise + bias[:, :, None, None]


def init_params(key, embedding_dim, noise_channels):
    """Deterministic synthetic parameters (shapes match the nn.Module __init__)."""
    E, C = embedding_dim, noise_channels
    ks = jax.random.split(key, 6)
    # nn.Linear(E, C): weight (C, E), bias (C,)
    ws = jax.random.normal(ks[0], (C, E), jnp.float32) * (1.0 / jnp.sqrt(E))
    bs = jax.random.normal(ks[1], (C,), jnp.float32) * 0.1
    wb = jax.random.normal(ks[2], (C, E), jnp.float32) * (1.0 / jnp.sqrt(E))
    bb = jax.random.normal(ks[3], (C,), jnp.float32) * 0.1
    # nn.Conv2d(C, C, 1): weight (C, C, 1, 1), bias (C,)
    wc = jax.random.normal(ks[4], (C, C, 1, 1), jnp.float32) * (1.0 / jnp.sqrt(C))
    bc = jax.random.normal(ks[5], (C,), jnp.float32) * 0.1
    return {
        "ws_t": ws.T,                      # (E, C)
        "bs": bs.reshape(1, C),
        "wb_t": wb.T,                      # (E, C)
        "bb": bb.reshape(1, C),
        "wc_t": wc.reshape(C, C).T,        # (C, C) -- 1x1 conv == channel matmul
        "bc": bc.reshape(1, C),
    }


def _run_case(key, B, E, C, H, W, atol, rtol):
    k_emb, k_noise, k_params = jax.random.split(key, 3)
    emb = jax.random.normal(k_emb, (B, E), jnp.float32)
    noise = jax.random.normal(k_noise, (B, C, H, W), jnp.float32)
    params = init_params(k_params, E, C)

    out = modulation_layer(emb, noise, params)
    jax.block_until_ready(out)

    ref = reference(emb, noise, params)
    assert out.shape == (B, C, H, W)
    assert jnp.allclose(out, ref, atol=atol, rtol=rtol), \
        f"mismatch vs reference for shape {(B, C, H, W)}"


if __name__ == "__main__":
    key = jax.random.PRNGKey(0)
    k0, k1, k2, k3 = jax.random.split(key, 4)

    # Small shape matching the module's intent (batch=2, emb=32, channels=4, 16x16):
    # single (8, 256) block.
    _run_case(k0, B=2, E=32, C=4, H=16, W=16, atol=1e-5, rtol=1e-5)

    # Larger shape: 4 MiB (512, 2048) blocks, 2 lane tiles.
    _run_case(k1, B=4, E=64, C=128, H=64, W=64, atol=1e-3, rtol=1e-3)

    # Awkward spatial size (H*W = 2209): cdiv grid with a masked partial lane block.
    _run_case(k2, B=2, E=48, C=24, H=47, W=47, atol=1e-4, rtol=1e-4)

    # Forced megacore split: single-block candidate > 1 MiB gets split into 2 row
    # blocks, exercising the masked partial row block as well.
    _run_case(k3, B=5, E=40, C=120, H=32, W=32, atol=1e-4, rtol=1e-4)

    print("KERNEL_OK")
</pallas_src>

<mosaic_0001>
module attributes {stable_mosaic.version = 11 : i64} {
  func.func @_modulate_kernel(%arg0: i32, %arg1: i32, %arg2: memref<8x1xf32, #tpu.memory_space<vmem>>, %arg3: memref<8x1xf32, #tpu.memory_space<vmem>>, %arg4: memref<8x256xf32, #tpu.memory_space<vmem>>, %arg5: memref<8x256xf32, #tpu.memory_space<vmem>>) attributes {dimension_semantics = [#tpu.dimension_semantics<parallel>, #tpu.dimension_semantics<parallel>], iteration_bounds = array<i64: 1, 1>, scalar_prefetch = 0 : i64, scratch_operands = 0 : i64, tpu.core_type = #tpu.core_type<tc>, window_params = [{transform_indices = @transform_0, window_bounds = array<i64: 8, 1>}, {transform_indices = @transform_1, window_bounds = array<i64: 8, 1>}, {transform_indices = @transform_2, window_bounds = array<i64: 8, 256>}, {transform_indices = @transform_3, window_bounds = array<i64: 8, 256>}]} {
    %c0 = arith.constant 0 : index
    %c0_0 = arith.constant 0 : index
    %0 = vector.load %arg4[%c0, %c0_0] : memref<8x256xf32, #tpu.memory_space<vmem>>, vector<8x256xf32>
    %c0_1 = arith.constant 0 : index
    %c0_2 = arith.constant 0 : index
    %1 = vector.load %arg2[%c0_1, %c0_2] : memref<8x1xf32, #tpu.memory_space<vmem>>, vector<8x1xf32>
    %2 = vector.broadcast %1 : vector<8x1xf32> to vector<8x256xf32>
    %3 = arith.mulf %2, %0 : vector<8x256xf32>
    %c0_3 = arith.constant 0 : index
    %c0_4 = arith.constant 0 : index
    %4 = vector.load %arg3[%c0_3, %c0_4] : memref<8x1xf32, #tpu.memory_space<vmem>>, vector<8x1xf32>
    %5 = vector.broadcast %4 : vector<8x1xf32> to vector<8x256xf32>
    %6 = arith.addf %3, %5 : vector<8x256xf32>
    %c0_5 = arith.constant 0 : index
    %c0_6 = arith.constant 0 : index
    %7 = vector.load %arg5[%c0_5, %c0_6] : memref<8x256xf32, #tpu.memory_space<vmem>>, vector<8x256xf32>
    tpu.vector_store %arg5[%c0_5, %c0_6], %6 {strides = array<i32>} : memref<8x256xf32, #tpu.memory_space<vmem>>, vector<8x256xf32>,
    return
  }
  func.func @transform_0(%arg0: i32, %arg1: i32) -> (i32, i32) {
    %c0_i32 = arith.constant 0 : i32
    %c0_i32_0 = arith.constant 0 : i32
    return %arg0, %c0_i32 : i32, i32
  }
  func.func @transform_1(%arg0: i32, %arg1: i32) -> (i32, i32) {
    %c0_i32 = arith.constant 0 : i32
    %c0_i32_0 = arith.constant 0 : i32
    return %arg0, %c0_i32 : i32, i32
  }
  func.func @transform_2(%arg0: i32, %arg1: i32) -> (i32, i32) {
    %c0_i32 = arith.constant 0 : i32
    return %arg0, %arg1 : i32, i32
  }
  func.func @transform_3(%arg0: i32, %arg1: i32) -> (i32, i32) {
    %c0_i32 = arith.constant 0 : i32
    return %arg0, %arg1 : i32, i32
  }
}

</mosaic_0001>

<bundles_post_ra>
// kernel: tpu_custom_call.1
= control target key start
LH: loop header
LB: loop body
LE: loop exit
PB: predicated region body
PF: predicated region fallthrough
CT: control target
= control target key end

     0   :  { %s122_s0 = inlined_call_operand.vmem [shape: f32[8,1], index: 0, kind: input, shape index: {}]   ;;  %s123_s1 = inlined_call_operand.vmem [shape: f32[8,1], index: 1, kind: input, shape index: {}]   ;;  %s124_s2 = inlined_call_operand.vmem [shape: f32[8,256], index: 2, kind: input, shape index: {}]   ;;  %s125_s3 = inlined_call_operand.hbm [shape: f32[8,256], index: 3, kind: output, shape index: {}]  }
   0x1   :  { %v17_v0 = vld [vmem:[%s122_s0] sm:$0xff] }
   0x2   :  { %8 = vsyncpa [#allocation3], 0  ;;  %v76_v1 = vmov 0   ;;  %v25_v2 = vld [vmem:[%s123_s1] sm:$0xff]  ;;  %v16_v5 = vld [vmem:[%s124_s2 + $0x8] sm:$0xff]  ;;  %s77_s20 = smov [#allocation2]  }
   0x3   :  { %51 = vset.pattern.permute.xlu0 %v76_v1  ;;  %v15_v4 = vld [vmem:[%s124_s2] sm:$0xff]  ;;  %s41_s0 = sshll.u32 %s77_s20, 4  ;;  %s42_s0 = int_to_ptr.vmem [resolvable:$true] %s41_s0 }
   0x4   :  { %20 = vperm.xlu0 %51, %v17_v0   ;;  %s52_s1 = scalar_lea.vmem %s42_s0, 256  ;;  %p57_p1 = scmp.lt.s32.totalorder %s42_s0, %s42_s0 }
   0x5   :  { %p53_p0 = scmp.ne.s32.totalorder %s42_s0, %s52_s1  ;;  %p58_p2 = scmp.lt.s32.totalorder %s52_s1, %s52_s1 }
   0x7   :  { %p59_p3 = por %p58_p2, %p57_p1 }
   0x8   :  { %28 = vperm.xlu0 %51, %v25_v2  }
   0x9   :  { %p60_p4 = pnand %p59_p3, %p53_p0 }
  0x83   :  { %v21_v3 = vpop.permute.xlu0 %20 }
  0x84   :  { %v23_v6 = vmul.f32 %v21_v3, %v15_v4  ;;  %v24_v7 = vmul.f32 %v21_v3, %v16_v5 }
  0x87   :  { %v29_v8 = vpop.permute.xlu0 %28 }
  0x88   :  { %v31_v9 = vadd.f32 %v29_v8, %v23_v6  ;;  %v32_v10 = vadd.f32 %v29_v8, %v24_v7 }
  0x8a   :  { %33 = vst [vmem:[#allocation2] sm:$0xff] %v31_v9  ;;  %34 = vst [vmem:[#allocation2 + $0x8] sm:$0xff] %v32_v10 }
  0x8b   :  { %63 = shalt.err (!%p60_p4)
}
  0x8c   :  { %s64_s2 = scalar_lea.hbm %s125_s3, 256 }
  0x8d   :  { %p65_p5 = scmp.ne.s32.totalorder %s125_s3, %s64_s2  ;;  %p68_p6 = scmp.lt.u32.totalorder %s64_s2, %s125_s3 }
  0x8f   :  { %p70_p7 = pnand %p68_p6, %p65_p5 }
  0x91   :  { %73 = shalt.err (!%p70_p7)
}
  0x92   :  { %44 = dma.vmem_to_hbm [thread:$0]  %s42_s0, 256, %s125_s3, [#allocation3]  }
  0x93   :  { %74 = dma.done.wait [#allocation3], 256  }
  0x94   :  { %75 = vsyncadd [#allocation3], 4294967040 }
  0x95   :  { %48 = vsyncpa [#allocation3], 1 }

</bundles_post_ra>
